<compile_context>
chip_gen: v5e
topology: v5e:2x2
jax: 0.10.0
libtpu: 0.0.40
codegen_flags: <defaults>
</compile_context>

<pallas_src>
import functools

import jax
import jax.numpy as jnp
from jax import lax
from jax.experimental import pallas as pl
from jax.experimental.pallas import tpu as pltpu


def _row_focal(x_f32, labels, *, gamma, alpha):
    """Per-row focal loss for one (TB, C) tile.

    x_f32:  (TB, C) float32 logits.
    labels: (TB, 1) int32 class indices (garbage in padded rows is fine; the
            caller masks / Pallas drops out-of-bounds writes).

    Returns (fl_row, onehot): fl_row (TB, 1) f32 focal loss of the label column,
    onehot (TB, C) bool.
    """
    m = jnp.max(x_f32, axis=-1, keepdims=True)
    s = x_f32 - m
    e = jnp.exp(s)                                   # single full-tile exp
    denom = jnp.sum(e, axis=-1, keepdims=True)       # (TB, 1)
    lse = jnp.log(denom)                             # per-row log-sum-exp

    cls = lax.broadcasted_iota(jnp.int32, x_f32.shape, 1)
    onehot = cls == labels                           # in-kernel "scatter"

    # Gather s at the label column: one select + one lane reduce.
    s_t = jnp.sum(jnp.where(onehot, s, 0.0), axis=-1, keepdims=True)
    log_p_t = s_t - lse                              # (TB, 1), always <= 0
    p_t = jnp.exp(log_p_t)                           # tiny per-row exp
    omp = 1.0 - p_t                                  # in [0, 1]

    g = float(gamma)
    if g == 0.0:
        w = jnp.ones_like(omp)
    elif g.is_integer() and g >= 1.0:                # default gamma=2 -> 1 mul
        w = omp
        for _ in range(int(g) - 1):
            w = w * omp
    else:
        w = omp ** jnp.float32(g)

    fl_row = jnp.float32(-alpha) * w * log_p_t       # (TB, 1)
    return fl_row, onehot


def _focal_rowsum_kernel(logits_ref, labels_ref, out_ref, *, gamma, alpha,
                         batch, block_rows):
    """mean/sum path: write the per-row focal loss (padded rows -> 0)."""
    x = logits_ref[...].astype(jnp.float32)
    fl_row, _ = _row_focal(x, labels_ref[...], gamma=gamma, alpha=alpha)
    row0 = pl.program_id(0) * block_rows
    rows = row0 + lax.broadcasted_iota(jnp.int32, fl_row.shape, 0)
    out_ref[...] = jnp.where(rows < batch, fl_row, 0.0)


def _focal_map_kernel(logits_ref, labels_ref, out_ref, *, gamma, alpha):
    """reduction='none': per-element focal loss tile, in the output dtype."""
    x = logits_ref[...].astype(jnp.float32)
    fl_row, onehot = _row_focal(x, labels_ref[...], gamma=gamma, alpha=alpha)
    out_ref[...] = jnp.where(onehot, fl_row, 0.0).astype(out_ref.dtype)


def focal_loss(logits, labels, *, gamma=2.0, alpha=1.0, reduction="mean",
               block_rows=None, target_block_bytes=2 * 1024 * 1024):
    """Pallas TPU FocalLoss.forward. logits: (B, C) float, labels: (B,) int."""
    B, C = logits.shape
    labels2d = labels.reshape(B, 1).astype(jnp.int32)   # tiny (B*4 B) reshape

    in_bytes = jnp.dtype(logits.dtype).itemsize
    if block_rows is None:
        cap = (target_block_bytes // max(1, C * in_bytes)) // 8 * 8
    else:
        cap = (block_rows // 8) * 8
    cap = int(min(max(cap, 8), 16384))

    if B <= cap:
        # Single tile; block == full array dims, so no (8,128) constraint and
        # no out-of-bounds rows at all.
        TB, n_tiles = B, 1
    else:
        # Multi-tile: TB multiple of 8, chosen to minimize last-tile waste.
        n_tiles = pl.cdiv(B, cap)
        TB = pl.cdiv(pl.cdiv(B, n_tiles), 8) * 8
        n_tiles = pl.cdiv(B, TB)

    in_specs = [
        pl.BlockSpec((TB, C), lambda i: (i, 0)),   # native dtype, full class dim
        pl.BlockSpec((TB, 1), lambda i: (i, 0)),
    ]
    cparams = pltpu.CompilerParams(
        dimension_semantics=("parallel",),
        vmem_limit_bytes=64 * 1024 * 1024,  # >= v5e/v6e defaults, == v7x physical
    )

    if reduction in ("mean", "sum"):
        kernel = functools.partial(_focal_rowsum_kernel, gamma=gamma,
                                   alpha=alpha, batch=B, block_rows=TB)
        rowsum = pl.pallas_call(
            kernel,
            out_shape=jax.ShapeDtypeStruct((B, 1), jnp.float32),
            grid=(n_tiles,),
            in_specs=in_specs,
            out_specs=pl.BlockSpec((TB, 1), lambda i: (i, 0)),
            compiler_params=cparams,
        )(logits, labels2d)
        total = jnp.sum(rowsum)                       # tiny (B,1) XLA reduce
        if reduction == "mean":
            return total / jnp.float32(B * C)         # mean over all B*C elems
        return total

    # reduction == 'none': per-element (B, C) output in the input dtype.
    kernel = functools.partial(_focal_map_kernel, gamma=gamma, alpha=alpha)
    return pl.pallas_call(
        kernel,
        out_shape=jax.ShapeDtypeStruct((B, C), logits.dtype),
        grid=(n_tiles,),
        in_specs=in_specs,
        out_specs=pl.BlockSpec((TB, C), lambda i: (i, 0)),
        compiler_params=cparams,
    )(logits, labels2d)


def focal_loss_reference(logits, labels, *, gamma=2.0, alpha=1.0,
                         reduction="mean"):
    """Pure-JAX reference mirroring the PyTorch forward."""
    onehot = jax.nn.one_hot(labels, logits.shape[-1], dtype=jnp.float32)
    log_p = jax.nn.log_softmax(logits.astype(jnp.float32), axis=-1)
    p_t = jnp.exp(log_p)
    fl = -alpha * (1.0 - p_t) ** gamma * log_p * onehot
    if reduction == "mean":
        return fl.mean()
    if reduction == "sum":
        return fl.sum()
    return fl


if __name__ == "__main__":
    key = jax.random.PRNGKey(0)
    k1, k2, k3, k4, k5, k6 = jax.random.split(key, 6)

    # 1) Small case matching the module defaults (gamma=2, alpha=1).
    B, C = 16, 10
    logits = jax.random.normal(k1, (B, C), jnp.float32) * 3.0
    labels = jax.random.randint(k2, (B,), 0, C, dtype=jnp.int32)
    for red in ("mean", "sum", "none"):
        out = jax.block_until_ready(
            focal_loss(logits, labels, gamma=2, alpha=1, reduction=red))
        ref = focal_loss_reference(logits, labels, gamma=2, alpha=1,
                                   reduction=red)
        assert out.shape == ref.shape, (red, out.shape, ref.shape)
        assert jnp.allclose(out, ref, atol=1e-5, rtol=1e-5), (
            red, float(jnp.max(jnp.abs(out - ref))))

    # 2) Non-aligned shapes + forced multi-tile grid with a ragged last tile
    #    (B=300, block_rows=128 -> 3 tiles of 104 rows, last tile partial).
    B2, C2 = 300, 37
    logits2 = jax.random.normal(k3, (B2, C2), jnp.float32) * 2.0
    labels2 = jax.random.randint(k4, (B2,), 0, C2, dtype=jnp.int32)
    for red in ("mean", "none"):
        out2 = jax.block_until_ready(
            focal_loss(logits2, labels2, reduction=red, block_rows=128))
        ref2 = focal_loss_reference(logits2, labels2, reduction=red)
        assert out2.shape == ref2.shape, (red, out2.shape, ref2.shape)
        assert jnp.allclose(out2, ref2, atol=1e-5, rtol=1e-4), (
            red, float(jnp.max(jnp.abs(out2 - ref2))))

    # 3) bf16 input (native-dtype DMA, f32 compute) and non-integer gamma.
    B3, C3 = 64, 128
    logits3 = (jax.random.normal(k5, (B3, C3), jnp.float32) * 2.0
               ).astype(jnp.bfloat16)
    labels3 = jax.random.randint(k6, (B3,), 0, C3, dtype=jnp.int32)
    out3 = jax.block_until_ready(focal_loss(logits3, labels3, reduction="mean"))
    ref3 = focal_loss_reference(logits3, labels3, reduction="mean")
    assert jnp.allclose(out3, ref3, atol=1e-4, rtol=1e-3), (
        float(out3), float(ref3))

    out4 = jax.block_until_ready(
        focal_loss(logits2, labels2, gamma=1.5, alpha=0.25, reduction="sum"))
    ref4 = focal_loss_reference(logits2, labels2, gamma=1.5, alpha=0.25,
                                reduction="sum")
    assert jnp.allclose(out4, ref4, atol=1e-4, rtol=1e-4), (
        float(out4), float(ref4))

    print("KERNEL_OK")
</pallas_src>

<mosaic_0001>
module attributes {stable_mosaic.version = 11 : i64} {
  func.func @_focal_rowsum_kernel(%arg0: i32, %arg1: memref<16x10xf32, #tpu.memory_space<vmem>>, %arg2: memref<16x1xi32, #tpu.memory_space<vmem>>, %arg3: memref<16x1xf32, #tpu.memory_space<vmem>>) attributes {dimension_semantics = [#tpu.dimension_semantics<parallel>], iteration_bounds = array<i64: 1>, scalar_prefetch = 0 : i64, scratch_operands = 0 : i64, tpu.core_type = #tpu.core_type<tc>, window_params = [{transform_indices = @transform_0, window_bounds = array<i64: 16, 10>}, {transform_indices = @transform_1, window_bounds = array<i64: 16, 1>}, {transform_indices = @transform_2, window_bounds = array<i64: 16, 1>}]} {
    %c0 = arith.constant 0 : index
    %c0_0 = arith.constant 0 : index
    %0 = vector.load %arg1[%c0, %c0_0] : memref<16x10xf32, #tpu.memory_space<vmem>>, vector<16x10xf32>
    %c0_1 = arith.constant 0 : index
    %c0_2 = arith.constant 0 : index
    %1 = vector.load %arg2[%c0_1, %c0_2] : memref<16x1xi32, #tpu.memory_space<vmem>>, vector<16x1xi32>
    %cst = arith.constant dense<0xFF800000> : vector<16xf32>
    %2 = vector.multi_reduction <maximumf>, %0, %cst [1] : vector<16x10xf32> to vector<16xf32>
    %3 = vector.shape_cast %2 : vector<16xf32> to vector<16x1xf32>
    %4 = vector.broadcast %3 : vector<16x1xf32> to vector<16x10xf32>
    %5 = arith.subf %0, %4 : vector<16x10xf32>
    %6 = math.exp %5 : vector<16x10xf32>
    %cst_3 = arith.constant dense<0.000000e+00> : vector<16xf32>
    %7 = vector.multi_reduction <add>, %6, %cst_3 [1] : vector<16x10xf32> to vector<16xf32>
    %8 = vector.shape_cast %7 : vector<16xf32> to vector<16x1xf32>
    %9 = math.log %8 : vector<16x1xf32>
    %10 = tpu.iota {dimensions = array<i32: 1>} : vector<16x10xi32>
    %11 = vector.broadcast %1 : vector<16x1xi32> to vector<16x10xi32>
    %12 = arith.cmpi eq, %10, %11 : vector<16x10xi32>
    %cst_4 = arith.constant 0.000000e+00 : f32
    %13 = vector.broadcast %cst_4 : f32 to vector<16x10xf32>
    %14 = arith.select %12, %5, %13 : vector<16x10xi1>, vector<16x10xf32>
    %cst_5 = arith.constant dense<0.000000e+00> : vector<16xf32>
    %15 = vector.multi_reduction <add>, %14, %cst_5 [1] : vector<16x10xf32> to vector<16xf32>
    %16 = vector.shape_cast %15 : vector<16xf32> to vector<16x1xf32>
    %17 = arith.subf %16, %9 : vector<16x1xf32>
    %18 = math.exp %17 : vector<16x1xf32>
    %cst_6 = arith.constant 1.000000e+00 : f32
    %19 = vector.broadcast %cst_6 : f32 to vector<16x1xf32>
    %20 = arith.subf %19, %18 : vector<16x1xf32>
    %21 = arith.mulf %20, %20 : vector<16x1xf32>
    %cst_7 = arith.constant -1.000000e+00 : f32
    %22 = vector.broadcast %cst_7 : f32 to vector<16x1xf32>
    %23 = arith.mulf %22, %21 : vector<16x1xf32>
    %24 = arith.mulf %23, %17 : vector<16x1xf32>
    %c16_i32 = arith.constant 16 : i32
    %25 = arith.muli %arg0, %c16_i32 : i32
    %26 = tpu.iota {dimensions = array<i32: 0>} : vector<16x1xi32>
    %27 = vector.broadcast %25 : i32 to vector<16x1xi32>
    %28 = arith.addi %27, %26 : vector<16x1xi32>
    %c16_i32_8 = arith.constant 16 : i32
    %29 = vector.broadcast %c16_i32_8 : i32 to vector<16x1xi32>
    %30 = arith.cmpi slt, %28, %29 : vector<16x1xi32>
    %cst_9 = arith.constant 0.000000e+00 : f32
    %31 = vector.broadcast %cst_9 : f32 to vector<16x1xf32>
    %32 = arith.select %30, %24, %31 : vector<16x1xi1>, vector<16x1xf32>
    %c0_10 = arith.constant 0 : index
    %c0_11 = arith.constant 0 : index
    %33 = vector.load %arg3[%c0_10, %c0_11] : memref<16x1xf32, #tpu.memory_space<vmem>>, vector<16x1xf32>
    tpu.vector_store %arg3[%c0_10, %c0_11], %32 {strides = array<i32>} : memref<16x1xf32, #tpu.memory_space<vmem>>, vector<16x1xf32>,
    return
  }
  func.func @transform_0(%arg0: i32) -> (i32, i32) {
    %c0_i32 = arith.constant 0 : i32
    %c0_i32_0 = arith.constant 0 : i32
    return %arg0, %c0_i32 : i32, i32
  }
  func.func @transform_1(%arg0: i32) -> (i32, i32) {
    %c0_i32 = arith.constant 0 : i32
    %c0_i32_0 = arith.constant 0 : i32
    return %arg0, %c0_i32 : i32, i32
  }
  func.func @transform_2(%arg0: i32) -> (i32, i32) {
    %c0_i32 = arith.constant 0 : i32
    %c0_i32_0 = arith.constant 0 : i32
    return %arg0, %c0_i32 : i32, i32
  }
}

</mosaic_0001>

<bundles_post_ra>
// kernel: tpu_custom_call.1
= control target key start
LH: loop header
LB: loop body
LE: loop exit
PB: predicated region body
PF: predicated region fallthrough
CT: control target
= control target key end

     0   :  { %vm15_vm0 = vcmask 80896   ;;  %v103_v1 = vmov 0   ;;  %v38_v7 = vlaneseq  ;;  %vm81_vm3 = vcmask 7168   ;;  %s143_s0 = inlined_call_operand.vmem [shape: f32[16,10], index: 0, kind: input, shape index: {}]   ;;  %s144_s1 = inlined_call_operand.vmem [shape: s32[16,1], index: 1, kind: input, shape index: {}]   ;;  %s145_s2 = inlined_call_operand.vmem [shape: f32[16,1], index: 2, kind: output, shape index: {}]  }
   0x1   :  { %v11_v0 = vld [vmem:[%s143_s0] sm:$0xff]  ;;  %89 = vset.pattern.permute.xlu1 %v103_v1  ;;  %90 = vset.pattern.permute.xlu0 %v103_v1  ;;  %v12_v4 = vld [vmem:[%s143_s0 + $0x8] sm:$0xff] }
   0x2   :  { %v13_v2 = vld [vmem:[%s144_s1] sm:$0xff]  ;;  %v16_v3 = vsel %vm15_vm0, %v11_v0, -inf  ;;  %v14_v5 = vld [vmem:[%s144_s1 + $0x8] sm:$0xff]  ;;  %v19_v6 = vsel %vm15_vm0, %v12_v4, -inf  ;;  %v39_v8 = vand.u32 127, %v38_v7 }
   0x3   :  { %41 = vperm.xlu1 %89, %v13_v2   ;;  %17 = vmax.xlane.f32.xlu0 %v16_v3 }
   0xb   :  { %44 = vperm.xlu1 %89, %v14_v5   ;;  %20 = vmax.xlane.f32.xlu0 %v19_v6 }
  0x75   :  { %v42_v9 = vpop.permute.xlu1 %41 }
  0x76   :  { %v18_v10 = vpop.xlane.xlu0 %17  ;;  %vm46_vm1 = vcmp.eq.s32.totalorder %v39_v8, %v42_v9 }
  0x77   :  { %v22_v11 = vsub.f32 %v11_v0, %v18_v10 }
  0x79   :  { %v24_v12 = vmul.f32 1.442695, %v22_v11  ;;  %v48_v13 = vsel %vm46_vm1, %v22_v11, 0.0 }
  0x7a   :  { %v50_v14 = vsel %vm15_vm0, %v48_v13, 0.0 }
  0x7b   :  { %91 = vpow2.f32 %v24_v12  ;;  %51 = vadd.xlane.f32.xlu0 %v50_v14 }
  0x7d   :  { %v45_v15 = vpop.permute.xlu1 %44 }
  0x7e   :  { %v21_v16 = vpop.xlane.xlu0 %20  ;;  %vm47_vm2 = vcmp.eq.s32.totalorder %v39_v8, %v45_v15 }
  0x7f   :  { %v23_v17 = vsub.f32 %v12_v4, %v21_v16 }
  0x81   :  { %v92_v18 = vpop.eup %91  ;;  %v26_v19 = vmul.f32 1.442695, %v23_v17  ;;  %v49_v20 = vsel %vm47_vm2, %v23_v17, 0.0 }
  0x82   :  { %v28_v21 = vsel %vm15_vm0, %v92_v18, 0.0  ;;  %v53_v22 = vsel %vm15_vm0, %v49_v20, 0.0 }
  0x83   :  { %93 = vpow2.f32 %v26_v19  ;;  %29 = vadd.xlane.f32.xlu2 %v28_v21  ;;  %54 = vadd.xlane.f32.xlu1 %v53_v22 }
  0x89   :  { %v94_v23 = vpop.eup %93 }
  0x8a   :  { %v31_v24 = vsel %vm15_vm0, %v94_v23, 0.0 }
  0x8b   :  { %32 = vadd.xlane.f32.xlu2 %v31_v24 }
  0xee   :  { %v52_v29 = vpop.xlane.xlu0 %51 }
  0xf6   :  { %v30_v25 = vpop.xlane.xlu2 %29  ;;  %v55_v34 = vpop.xlane.xlu1 %54 }
  0xf7   :  { %95 = vlog2.f32 %v30_v25 }
  0xfd   :  { %v96_v26 = vpop.eup %95 }
  0xfe   :  { %v35_v27 = vmul.f32 0.6931472, %v96_v26  ;;  %v33_v28 = vpop.xlane.xlu2 %32 }
  0xff   :  { %97 = vlog2.f32 %v33_v28 }
 0x100   :  { %v56_v30 = vsub.f32 %v52_v29, %v35_v27 }
 0x102   :  { %v58_v31 = vmul.f32 1.442695, %v56_v30 }
 0x104   :  { %99 = vpow2.f32 %v58_v31 }
 0x105   :  { %v98_v32 = vpop.eup %97 }
 0x106   :  { %v37_v33 = vmul.f32 0.6931472, %v98_v32 }
 0x108   :  { %v57_v35 = vsub.f32 %v55_v34, %v37_v33 }
 0x10a   :  { %v100_v36 = vpop.eup %99  ;;  %v60_v37 = vmul.f32 1.442695, %v57_v35 }
 0x10b   :  { %v62_v38 = vsub.f32 1.0, %v100_v36 }
 0x10c   :  { %101 = vpow2.f32 %v60_v37 }
 0x10d   :  { %v64_v39 = vmul.f32 %v62_v38, %v62_v38 }
 0x10f   :  { %v66_v40 = vmul.f32 -1.0, %v64_v39 }
 0x111   :  { %v68_v41 = vmul.f32 %v66_v40, %v56_v30 }
 0x112   :  { %v102_v42 = vpop.eup %101 }
 0x113   :  { %82 = vst.msk [vmem:[%s145_s2] sm:$0xff] %vm81_vm3, %v68_v41  ;;  %v63_v43 = vsub.f32 1.0, %v102_v42 }
 0x115   :  { %v65_v44 = vmul.f32 %v63_v43, %v63_v43 }
 0x117   :  { %v67_v45 = vmul.f32 -1.0, %v65_v44 }
 0x119   :  { %v69_v46 = vmul.f32 %v67_v45, %v57_v35 }
 0x11b   :  { %83 = vst.msk [vmem:[%s145_s2 + $0x8] sm:$0xff] %vm81_vm3, %v69_v46 }

</bundles_post_ra>
